<compile_context>
chip_gen: v7x
topology: tpu7x:2x2x1
jax: 0.10.0
libtpu: 0.0.40
codegen_flags: <defaults>
</compile_context>

<pallas_src>
import jax
import jax.numpy as jnp
from jax.experimental import pallas as pl
from jax.experimental.pallas import tpu as pltpu


# ----------------------------------------------------------------------------
# Kernels
# ----------------------------------------------------------------------------
def _prepend_cls_kernel_2d(cls_ref, x_ref, o_ref):
    # Fast path (E % 128 == 0), rows flattened:
    #   cls_ref: (1, E)           o_ref[:, 0:E]       = cls (broadcast)
    #   x_ref  : (TB, N*E)        o_ref[:, E:(N+1)*E] = x   (lane-aligned)
    tb = x_ref.shape[0]
    e = cls_ref.shape[1]
    ne = x_ref.shape[1]
    # cls traffic is ~1/(N+1) of the bytes; plain broadcast keeps this path
    # trivially correct (the kernel is DMA-bound, vreg filler here is free).
    o_ref[:, pl.ds(0, e)] = jnp.broadcast_to(cls_ref[...], (tb, e))
    o_ref[:, pl.ds(e, ne)] = x_ref[...]


def _prepend_cls_kernel_3d(cls_ref, x_ref, o_ref):
    # Fallback path (E % 128 != 0): E stays the minor (lane) dim so the x
    # payload is lane-dense; only the sequence axis carries the +1 offset.
    #   cls_ref: (1, 1, E)   x_ref: (TB, N, E)   o_ref: (TB, N+1, E)
    tb = x_ref.shape[0]
    n = x_ref.shape[1]
    e = cls_ref.shape[2]
    o_ref[:, pl.ds(0, 1), :] = jnp.broadcast_to(cls_ref[...], (tb, 1, e))
    o_ref[:, pl.ds(1, n), :] = x_ref[...]


# ----------------------------------------------------------------------------
# Tiling heuristic
# ----------------------------------------------------------------------------
def _pick_batch_tile(batch: int, row_out_bytes: int, target_bytes: int = 2 << 20) -> int:
    """Rows of the batch per grid step.

    Targets ~2 MiB output tiles, keeps the double-buffered footprint small
    enough for every TPU generation, and keeps >= ~4 grid steps when possible
    so the ("parallel",) batch axis feeds both v7x TensorCores.
    """
    if batch * row_out_bytes <= target_bytes or batch <= 8:
        # Whole batch in one block; block == full extent satisfies the
        # sublane rule even when batch is not a multiple of 8.
        return batch
    tb = max(8, ((target_bytes // max(row_out_bytes, 1)) // 8) * 8)
    tb = min(tb, batch)
    while tb > 8 and pl.cdiv(batch, tb) < 4:
        tb = max(8, ((tb // 2) // 8) * 8)
    return tb


# ----------------------------------------------------------------------------
# Wrapper
# ----------------------------------------------------------------------------
def positional_encoding(x: jax.Array, class_token: jax.Array,
                        *, batch_tile: int | None = None) -> jax.Array:
    """x: (B, N, E), class_token: (E,) -> (B, N+1, E) == concat([cls, x], axis=1)."""
    B, N, E = x.shape
    dtype = x.dtype
    itemsize = jnp.dtype(dtype).itemsize

    # Note: the parameter is cast to the activation dtype (matches the output
    # dtype of torch.cat when params/activations already share a dtype).
    cls = class_token.astype(dtype)

    lane_aligned = (E % 128 == 0)
    row_in_bytes = N * E * itemsize
    row_out_bytes = (N + 1) * E * itemsize

    if batch_tile is None:
        tb = _pick_batch_tile(B, row_out_bytes)
    else:
        tb = max(1, min(int(batch_tile), B))
        if lane_aligned and tb < B and tb % 8 != 0:
            # 2-D fast path: sublane block dim must be a multiple of 8 unless
            # it spans the whole batch.
            tb = max(8, (tb // 8) * 8)

    grid = (pl.cdiv(B, tb),)  # partial last block handled by Pallas

    # Double-buffered footprint (2 buffers x (in tile + out tile)) + cls.
    footprint = 2 * tb * (row_in_bytes + row_out_bytes) + E * itemsize
    vmem_limit = int(min(64 << 20, max(32 << 20, 2 * footprint)))

    compiler_params = pltpu.CompilerParams(
        # Batch-tile axis is independent -> shard across TensorCores (v7x).
        dimension_semantics=("parallel",),
        vmem_limit_bytes=vmem_limit,
    )
    cost = pl.CostEstimate(
        flops=0,
        transcendentals=0,
        bytes_accessed=(B * N * E + B * (N + 1) * E + E) * itemsize,
    )
    # NOTE: default Buffered(2) pipelining is kept; bump to pl.Buffered(3) via
    # pipeline_mode on the x/out specs only if profiling shows exposed DMA.

    if lane_aligned:
        cls2d = cls.reshape(1, E)
        x2d = x.reshape(B, N * E)  # free row-major bitcast for default layouts
        out2d = pl.pallas_call(
            _prepend_cls_kernel_2d,
            out_shape=jax.ShapeDtypeStruct((B, (N + 1) * E), dtype),
            grid_spec=pltpu.PrefetchScalarGridSpec(
                num_scalar_prefetch=0,
                grid=grid,
                in_specs=[
                    # Class token: same (1, E) block every grid step.
                    pl.BlockSpec((1, E), lambda b: (0, 0)),
                    # TB flattened batch rows of x per grid step.
                    pl.BlockSpec((tb, N * E), lambda b: (b, 0)),
                ],
                out_specs=pl.BlockSpec((tb, (N + 1) * E), lambda b: (b, 0)),
            ),
            compiler_params=compiler_params,
            cost_estimate=cost,
        )(cls2d, x2d)
        return out2d.reshape(B, N + 1, E)

    # E not a multiple of 128: 3-D layout keeps x lane-dense.
    cls3d = cls.reshape(1, 1, E)
    out = pl.pallas_call(
        _prepend_cls_kernel_3d,
        out_shape=jax.ShapeDtypeStruct((B, N + 1, E), dtype),
        grid_spec=pltpu.PrefetchScalarGridSpec(
            num_scalar_prefetch=0,
            grid=grid,
            in_specs=[
                pl.BlockSpec((1, 1, E), lambda b: (0, 0, 0)),
                pl.BlockSpec((tb, N, E), lambda b: (b, 0, 0)),
            ],
            out_specs=pl.BlockSpec((tb, N + 1, E), lambda b: (b, 0, 0)),
        ),
        compiler_params=compiler_params,
        cost_estimate=cost,
    )(cls3d, x)
    return out


if __name__ == "__main__":
    k0, k1 = jax.random.split(jax.random.PRNGKey(0))

    # Small shapes consistent with the module: batch=2, seq=8, embed=32.
    B, N, E = 2, 8, 32
    x = jax.random.normal(k0, (B, N, E), dtype=jnp.float32)
    # Matches nn.Parameter(torch.zeros(embed_size)) — deterministic zeros.
    class_token = jnp.zeros((E,), dtype=jnp.float32)

    out = jax.block_until_ready(positional_encoding(x, class_token))
    ref = jnp.concatenate([jnp.broadcast_to(class_token, (B, 1, E)), x], axis=1)
    assert out.shape == (B, N + 1, E), out.shape
    assert jnp.array_equal(out, ref), "mismatch vs reference (E % 128 != 0 path)"

    # Second check: lane-aligned fast path, bf16, partial last batch block
    # (B=20 not divisible by the forced batch_tile=8 -> cdiv grid of 3 steps).
    B2, N2, E2 = 20, 8, 128
    x2 = jax.random.normal(k1, (B2, N2, E2), dtype=jnp.bfloat16)
    ct2 = jnp.zeros((E2,), dtype=jnp.float32)
    out2 = jax.block_until_ready(positional_encoding(x2, ct2, batch_tile=8))
    ref2 = jnp.concatenate(
        [jnp.broadcast_to(ct2.astype(x2.dtype), (B2, 1, E2)), x2], axis=1)
    assert out2.shape == (B2, N2 + 1, E2), out2.shape
    assert jnp.array_equal(out2, ref2), "mismatch vs reference (lane-aligned path)"

    print("KERNEL_OK")
</pallas_src>

<mosaic_0001>
module attributes {stable_mosaic.version = 11 : i64} {
  func.func @_prepend_cls_kernel_3d(%arg0: i32, %arg1: memref<1x1x32xf32, #tpu.memory_space<vmem>>, %arg2: memref<2x8x32xf32, #tpu.memory_space<vmem>>, %arg3: memref<2x9x32xf32, #tpu.memory_space<vmem>>) attributes {dimension_semantics = [#tpu.dimension_semantics<parallel>], iteration_bounds = array<i64: 1>, scalar_prefetch = 0 : i64, scratch_operands = 0 : i64, tpu.core_type = #tpu.core_type<tc>, window_params = [{pipeline_mode = #tpu.pipeline_mode<synchronous>, transform_indices = @transform_0, window_bounds = array<i64: 1, 1, 32>}, {transform_indices = @transform_1, window_bounds = array<i64: 2, 8, 32>}, {transform_indices = @transform_2, window_bounds = array<i64: 2, 9, 32>}]} {
    %c0 = arith.constant 0 : index
    %c0_0 = arith.constant 0 : index
    %c0_1 = arith.constant 0 : index
    %0 = vector.load %arg1[%c0, %c0_0, %c0_1] : memref<1x1x32xf32, #tpu.memory_space<vmem>>, vector<1x1x32xf32>
    %1 = vector.shape_cast %0 : vector<1x1x32xf32> to vector<1x1x32xf32>
    %2 = vector.broadcast %1 : vector<1x1x32xf32> to vector<2x1x32xf32>
    %c0_2 = arith.constant 0 : index
    %c0_3 = arith.constant 0 : index
    %c0_4 = arith.constant 0 : index
    %3 = vector.load %arg3[%c0_2, %c0_3, %c0_4] : memref<2x9x32xf32, #tpu.memory_space<vmem>>, vector<2x1x32xf32>
    tpu.vector_store %arg3[%c0_2, %c0_3, %c0_4], %2 {strides = array<i32>} : memref<2x9x32xf32, #tpu.memory_space<vmem>>, vector<2x1x32xf32>,
    %c0_5 = arith.constant 0 : index
    %c0_6 = arith.constant 0 : index
    %c0_7 = arith.constant 0 : index
    %4 = vector.load %arg2[%c0_5, %c0_6, %c0_7] : memref<2x8x32xf32, #tpu.memory_space<vmem>>, vector<2x8x32xf32>
    %c0_8 = arith.constant 0 : index
    %c1 = arith.constant 1 : index
    %c0_9 = arith.constant 0 : index
    %5 = vector.load %arg3[%c0_8, %c1, %c0_9] : memref<2x9x32xf32, #tpu.memory_space<vmem>>, vector<2x8x32xf32>
    tpu.vector_store %arg3[%c0_8, %c1, %c0_9], %4 {strides = array<i32>} : memref<2x9x32xf32, #tpu.memory_space<vmem>>, vector<2x8x32xf32>,
    return
  }
  func.func @transform_0(%arg0: i32) -> (i32, i32, i32) {
    %c0_i32 = arith.constant 0 : i32
    %c0_i32_0 = arith.constant 0 : i32
    %c0_i32_1 = arith.constant 0 : i32
    %c0_i32_2 = arith.constant 0 : i32
    return %c0_i32, %c0_i32_0, %c0_i32_1 : i32, i32, i32
  }
  func.func @transform_1(%arg0: i32) -> (i32, i32, i32) {
    %c0_i32 = arith.constant 0 : i32
    %c0_i32_0 = arith.constant 0 : i32
    %c0_i32_1 = arith.constant 0 : i32
    return %arg0, %c0_i32, %c0_i32_0 : i32, i32, i32
  }
  func.func @transform_2(%arg0: i32) -> (i32, i32, i32) {
    %c0_i32 = arith.constant 0 : i32
    %c0_i32_0 = arith.constant 0 : i32
    %c0_i32_1 = arith.constant 0 : i32
    return %arg0, %c0_i32, %c0_i32_0 : i32, i32, i32
  }
}

</mosaic_0001>

<bundles_post_ra>
// kernel: tpu_custom_call.1
= control target key start
LH: loop header
LB: loop body
LE: loop exit
PB: predicated region body
PF: predicated region fallthrough
CT: control target
= control target key end

     0   :  { %7 = vsyncpa [#allocation3], 0  ;;  %s166_s0 = inlined_call_operand.hbm [shape: f32[1,1,32], index: 0, kind: input, shape index: {}]   ;;  %s167_s1 = inlined_call_operand.hbm [shape: f32[2,8,32], index: 1, kind: input, shape index: {}]   ;;  %s168_s2 = inlined_call_operand.vmem [shape: f32[2,9,32], index: 2, kind: output, shape index: {}]  }
   0x1   :  { %8 = vsyncpa [#allocation5], 0  ;;  %s104_s9 = smov [#allocation2]   ;;  %s105_s11 = smov [#allocation4]  }
   0x2   :  { %s15_s10 = sshll.u32 %s104_s9, 4  ;;  %s24_s12 = sshll.u32 %s105_s11, 4  ;;  %s16_s10 = int_to_ptr.vmem [resolvable:$true] %s15_s10  ;;  %s123_s12 = int_to_ptr.vmem [resolvable:$true] %s24_s12 }
   0x3   :  { %s56_s15 = scalar_lea.hbm %s166_s0, 16 }
   0x4   :  { %p57_p0 = scmp.ne.s32.totalorder %s166_s0, %s56_s15  ;;  %p60_p1 = scmp.lt.u32.totalorder %s56_s15, %s166_s0 }
   0x6   :  { %p62_p2 = pnand %p60_p1, %p57_p0 }
   0x8   :  { %65 = shalt.err (!%p62_p2)
}
   0x9   :  { %s66_s20 = scalar_lea.vmem %s16_s10, 16  ;;  %s70_s21 = scalar_lea.vmem %s16_s10, 32 }
   0xa   :  { %p67_p3 = scmp.ne.s32.totalorder %s16_s10, %s66_s20  ;;  %p71_p4 = scmp.lt.s32.totalorder %s16_s10, %s16_s10 }
   0xb   :  { %p72_p5 = scmp.lt.s32.totalorder %s70_s21, %s66_s20 }
   0xd   :  { %p73_p6 = por %p72_p5, %p71_p4 }
   0xf   :  { %p74_p7 = pnand %p73_p6, %p67_p3 }
  0x11   :  { %77 = shalt.err (!%p74_p7)
}
  0x12   :  { %18 = dma.hbm_to_vmem [thread:$0]  %s166_s0, 16, %s16_s10, [#allocation3]  }
  0x13   :  { %s78_s26 = scalar_lea.hbm %s167_s1, 256 }
  0x14   :  { %p79_p8 = scmp.ne.s32.totalorder %s167_s1, %s78_s26  ;;  %p82_p9 = scmp.lt.u32.totalorder %s78_s26, %s167_s1 }
  0x16   :  { %p84_p10 = pnand %p82_p9, %p79_p8 }
  0x18   :  { %87 = shalt.err (!%p84_p10)
}
  0x19   :  { %s88_s3 = scalar_lea.vmem %s123_s12, 256  ;;  %p93_p12 = scmp.lt.s32.totalorder %s123_s12, %s123_s12 }
  0x1a   :  { %p89_p11 = scmp.ne.s32.totalorder %s123_s12, %s88_s3  ;;  %p94_p13 = scmp.lt.s32.totalorder %s88_s3, %s88_s3 }
  0x1c   :  { %p95_p0 = por %p94_p13, %p93_p12 }
  0x1e   :  { %p96_p1 = pnand %p95_p0, %p89_p11 }
  0x20   :  { %99 = shalt.err (!%p96_p1)
}
  0x21   :  { %s106_s0 = smov 128   ;;  %s107_s4 = smov 8  }
  0x22   :  { %30 = dma.hbm_to_vmem [thread:$0]  %s167_s1, 256, %s123_s12, [#allocation5], %s106_s0, %s106_s0, %s107_s4  }
  0x23   :  { %100 = dma.done.wait [#allocation3], 16  }
  0x24   :  { %101 = vsyncadd [#allocation3], 4294967280 }
  0x25   :  { %102 = dma.done.wait [#allocation5], 256  }
  0x26   :  { %103 = vsyncadd [#allocation5], 4294967040  ;;  %vm38_vm0 = vcmask 253952   ;;  %vm43_vm1 = vcmask 261120   ;;  %v37_v0 = vld [vmem:[#allocation2] sm:$0x1] }
  0x27   :  { %v41_v1 = vld [vmem:[#allocation4] sm:$0xff]  ;;  %v42_v2 = vld [vmem:[#allocation4 + $0x8] sm:$0xff]  ;;  %39 = vst.msk [vmem:[%s168_s2] sm:$0x1] %vm38_vm0, %v37_v0  ;;  %40 = vst.msk [vmem:[%s168_s2 + $0x10] sm:$0x1] %vm38_vm0, %v37_v0 }
  0x28   :  { %44 = vst.msk [vmem:[%s168_s2 + $0x1] sm:$0xff] %vm43_vm1, %v41_v1  ;;  %45 = vst.msk [vmem:[%s168_s2 + $0x11] sm:$0xff] %vm43_vm1, %v42_v2 }
  0x29   :  { %50 = vsyncpa [#allocation3], 1 }
  0x2a   :  { %51 = vsyncpa [#allocation5], 1 }

</bundles_post_ra>
